<compile_context>
chip_gen: v7x
topology: tpu7x:2x2x1
jax: 0.10.0
libtpu: 0.0.40
codegen_flags: <defaults>
</compile_context>

<pallas_src>
import functools

import jax
import jax.numpy as jnp
from jax.experimental import pallas as pl
from jax.experimental.pallas import tpu as pltpu

_MiB = 1024 * 1024
_HAS_BUFFERED = hasattr(pl, "Buffered")


def _pointwise_conv1d_kernel(x_ref, w_ref, b_ref, o_ref, *, precision):
    # x_ref: (C_in, T_TILE)     streamed input tile (batch dim squeezed)
    # w_ref: (CO_TILE, C_in)    VMEM-resident weight tile
    # b_ref: (CO_TILE, 1)       VMEM-resident bias tile (f32)
    # o_ref: (CO_TILE, T_TILE)  streamed output tile (batch dim squeezed)
    y = jnp.dot(
        w_ref[...],
        x_ref[...],
        preferred_element_type=jnp.float32,
        precision=precision,
    )
    o_ref[...] = (y + b_ref[...]).astype(o_ref.dtype)


def _vmem_budget_bytes():
    """(working-set budget, vmem_limit cap) branched on the chip's VMEM size."""
    try:
        vmem_cap = pltpu.get_tpu_info().vmem_capacity_bytes
    except Exception:  # no TPU info available -> assume the smallest (v7x, 64 MiB)
        vmem_cap = 64 * _MiB
    if vmem_cap >= 96 * _MiB:      # v5e / v6e: 128 MiB physical VMEM
        return 48 * _MiB, 96 * _MiB
    return 28 * _MiB, 48 * _MiB    # v7x: 64 MiB physical VMEM


def _pick_tiles(c_in, c_out, t, x_item, w_item, out_item, budget_bytes):
    """Choose C_out / T tiles so x streams once and tiles stay lane-dense."""
    # Keep *all* of C_out in one resident weight tile unless the weight itself
    # is huge: splitting C_out re-streams x once per C_out block, which doubles
    # (or worse) the dominant HBM read of this memory-bound kernel.
    if c_out * c_in * w_item <= 8 * _MiB or c_out <= 256:
        co_tile = c_out
    else:
        co_tile = min(c_out, max(128, (8 * _MiB // (c_in * w_item)) // 128 * 128))
    n_co = pl.cdiv(c_out, co_tile)

    # Single-buffer big weight/bias tiles (their block index only changes at
    # C_out boundaries) so VMEM is spent on larger time tiles instead.
    weight_bufs = 1 if (_HAS_BUFFERED and co_tile * c_in * w_item > 2 * _MiB) else 2

    def working_set(tt):
        return (2 * c_in * tt * x_item                        # x tile, double-buffered
                + 2 * co_tile * tt * out_item                 # out tile, double-buffered
                + co_tile * tt * 4                            # f32 dot intermediate
                + weight_bufs * co_tile * (c_in * w_item + 4))  # weight + bias

    if t < 128:
        # Tiny T: a single full-extent time block is the legal layout.
        t_tile = t
    else:
        # 128-aligned tiles; divisibility NOT required -- the last block is
        # ragged (pl.cdiv), which keeps stores unmasked and VMEM bounded for
        # large non-power-of-two T.  Capped at 1024 so the v7x megacore split
        # over the time axis gets several grid steps per core.
        t_tile = 128
        for cand in (1024, 512, 256, 128):
            if cand <= t and working_set(cand) <= budget_bytes:
                t_tile = cand
                break
    return co_tile, n_co, t_tile, weight_bufs, working_set(t_tile)


def pointwise_conv1d(x, weight, bias, *, compute_dtype=None, out_dtype=None,
                     precision=None):
    """Pointwise (kernel_size=1, stride=1, padding=0) Conv1d.

    Args:
      x:      (B, C_in, T) input.
      weight: (C_out, C_in) Conv1d weight with the trailing k=1 axis squeezed.
      bias:   (C_out,) bias.
      compute_dtype: dtype for the streamed x / resident weight tiles.
        Recommended on v6e/v7x: jnp.bfloat16 -- the kernel is HBM-bound, so
        halving x/out bytes is ~1.7-2x wall clock; accumulation stays f32.
      out_dtype: output dtype (defaults to x.dtype).
      precision: MXU matmul precision.  None (DEFAULT) is recommended; pass
        jax.lax.Precision.HIGHEST only if exact f32-Conv1d matching is
        required (it makes 512+-channel shapes MXU-bound).

    Returns:
      (B, C_out, T) output.
    """
    # TODO(synk): stride>1 / padding>0 Conv1d variants are not implemented
    # (the module's defaults -- the pointwise case -- are).
    B, C_in, T = x.shape
    C_out = weight.shape[0]
    if out_dtype is None:
        out_dtype = x.dtype
    if compute_dtype is not None:
        x = x.astype(compute_dtype)
        weight = weight.astype(compute_dtype)
    bias2d = bias.astype(jnp.float32).reshape(C_out, 1)

    x_item = jnp.dtype(x.dtype).itemsize
    w_item = jnp.dtype(weight.dtype).itemsize
    out_item = jnp.dtype(out_dtype).itemsize

    budget, vmem_cap = _vmem_budget_bytes()
    co_tile, n_co, t_tile, weight_bufs, ws_bytes = _pick_tiles(
        C_in, C_out, T, x_item, w_item, out_item, budget)
    n_t = pl.cdiv(T, t_tile)

    # Grid: C_out blocks outermost (weight re-fetched only when it changes --
    # usually never since n_co == 1), then time, then batch.  All axes are
    # parallel; with B == 1 the large time axis is what the megacore split
    # lands on.
    grid = (n_co, n_t, B)

    # TODO(synk): for very large C_in (weight tile alone > ~8 MiB) a K grid
    # axis with a VMEM f32 accumulator would be needed; not implemented here.

    wb_mode = {"pipeline_mode": pl.Buffered(1)} if weight_bufs == 1 else {}

    cost = pl.CostEstimate(
        flops=2 * B * C_out * C_in * T,
        transcendentals=0,
        bytes_accessed=(n_co * B * C_in * T * x_item   # x re-read once per C_out block
                        + C_out * C_in * w_item
                        + C_out * 4
                        + B * C_out * T * out_item),
    )

    vmem_limit = int(min(max(2 * ws_bytes, 32 * _MiB), vmem_cap))

    kernel = functools.partial(_pointwise_conv1d_kernel, precision=precision)

    return pl.pallas_call(
        kernel,
        out_shape=jax.ShapeDtypeStruct((B, C_out, T), out_dtype),
        grid_spec=pltpu.PrefetchScalarGridSpec(
            num_scalar_prefetch=0,
            grid=grid,
            in_specs=[
                # batch dim squeezed -> kernel sees a 2-D (C_in, t_tile) ref
                pl.BlockSpec((None, C_in, t_tile), lambda co, t, b: (b, 0, t)),
                # weight / bias: index map constant in t & b -> VMEM-resident
                pl.BlockSpec((co_tile, C_in), lambda co, t, b: (co, 0), **wb_mode),
                pl.BlockSpec((co_tile, 1), lambda co, t, b: (co, 0), **wb_mode),
            ],
            out_specs=pl.BlockSpec(
                (None, co_tile, t_tile), lambda co, t, b: (b, co, t)
            ),
        ),
        compiler_params=pltpu.CompilerParams(
            dimension_semantics=("parallel", "parallel", "parallel"),
            vmem_limit_bytes=vmem_limit,
        ),
        cost_estimate=cost,
    )(x, weight, bias2d)


if __name__ == "__main__":
    # Small shapes consistent with the module's forward: (batch, in_channels, time).
    B, C_in, C_out, T = 2, 4, 8, 16

    key = jax.random.PRNGKey(0)
    kx, kw, kb = jax.random.split(key, 3)

    x = jax.random.normal(kx, (B, C_in, T), dtype=jnp.float32)
    # Conv1d weight shape (C_out, C_in, 1) with the k=1 axis squeezed.
    weight = jax.random.normal(kw, (C_out, C_in), dtype=jnp.float32) * 0.1
    bias = jax.random.normal(kb, (C_out,), dtype=jnp.float32) * 0.1

    out = jax.block_until_ready(pointwise_conv1d(x, weight, bias))

    # Reference (einsum == Conv1d with kernel_size=1), computed in full f32.
    # Tolerance covers the kernel's DEFAULT (bf16-input) MXU precision.
    ref = (
        jnp.einsum("oc,bct->bot", weight, x, precision=jax.lax.Precision.HIGHEST)
        + bias[None, :, None]
    )
    assert out.shape == (B, C_out, T)
    err = float(jnp.max(jnp.abs(out - ref)))
    assert jnp.allclose(out, ref, atol=5e-2, rtol=5e-2), err

    print("KERNEL_OK")
</pallas_src>

<mosaic_0001>
module attributes {stable_mosaic.version = 11 : i64} {
  func.func @_pointwise_conv1d_kernel(%arg0: i32, %arg1: i32, %arg2: i32, %arg3: memref<1x4x16xf32, #tpu.memory_space<vmem>>, %arg4: memref<8x4xf32, #tpu.memory_space<vmem>>, %arg5: memref<8x1xf32, #tpu.memory_space<vmem>>, %arg6: memref<1x8x16xf32, #tpu.memory_space<vmem>>) attributes {dimension_semantics = [#tpu.dimension_semantics<parallel>, #tpu.dimension_semantics<parallel>, #tpu.dimension_semantics<parallel>], iteration_bounds = array<i64: 1, 1, 2>, scalar_prefetch = 0 : i64, scratch_operands = 0 : i64, tpu.core_type = #tpu.core_type<tc>, window_params = [{transform_indices = @transform_0, window_bounds = array<i64: 1, 4, 16>}, {transform_indices = @transform_1, window_bounds = array<i64: 8, 4>}, {transform_indices = @transform_2, window_bounds = array<i64: 8, 1>}, {transform_indices = @transform_3, window_bounds = array<i64: 1, 8, 16>}]} {
    %c0 = arith.constant 0 : index
    %c0_0 = arith.constant 0 : index
    %0 = vector.load %arg4[%c0, %c0_0] : memref<8x4xf32, #tpu.memory_space<vmem>>, vector<8x4xf32>
    %c0_1 = arith.constant 0 : index
    %c0_2 = arith.constant 0 : index
    %c0_3 = arith.constant 0 : index
    %1 = vector.load %arg3[%c0_1, %c0_2, %c0_3] : memref<1x4x16xf32, #tpu.memory_space<vmem>>, vector<1x4x16xf32>
    %2 = vector.shape_cast %1 : vector<1x4x16xf32> to vector<4x16xf32>
    %cst = arith.constant dense<0.000000e+00> : vector<8x16xf32>
    %3 = tpu.matmul %0, %2, %cst {dimension_numbers = #tpu.dot_dimension_numbers<[1], [0], [0], [1], [0, 0, 1, 1], [], []>} : vector<8x4xf32>, vector<4x16xf32>, vector<8x16xf32> -> vector<8x16xf32>
    %c0_4 = arith.constant 0 : index
    %c0_5 = arith.constant 0 : index
    %4 = vector.load %arg5[%c0_4, %c0_5] : memref<8x1xf32, #tpu.memory_space<vmem>>, vector<8x1xf32>
    %5 = vector.broadcast %4 : vector<8x1xf32> to vector<8x16xf32>
    %6 = arith.addf %3, %5 : vector<8x16xf32>
    %c0_6 = arith.constant 0 : index
    %c0_7 = arith.constant 0 : index
    %c0_8 = arith.constant 0 : index
    %7 = vector.load %arg6[%c0_6, %c0_7, %c0_8] : memref<1x8x16xf32, #tpu.memory_space<vmem>>, vector<1x8x16xf32>
    %8 = vector.shape_cast %7 : vector<1x8x16xf32> to vector<8x16xf32>
    %9 = vector.shape_cast %6 : vector<8x16xf32> to vector<1x8x16xf32>
    tpu.vector_store %arg6[%c0_6, %c0_7, %c0_8], %9 {strides = array<i32>} : memref<1x8x16xf32, #tpu.memory_space<vmem>>, vector<1x8x16xf32>,
    return
  }
  func.func @transform_0(%arg0: i32, %arg1: i32, %arg2: i32) -> (i32, i32, i32) {
    %c0_i32 = arith.constant 0 : i32
    %c0_i32_0 = arith.constant 0 : i32
    return %arg2, %c0_i32, %arg1 : i32, i32, i32
  }
  func.func @transform_1(%arg0: i32, %arg1: i32, %arg2: i32) -> (i32, i32) {
    %c0_i32 = arith.constant 0 : i32
    %c0_i32_0 = arith.constant 0 : i32
    return %arg0, %c0_i32 : i32, i32
  }
  func.func @transform_2(%arg0: i32, %arg1: i32, %arg2: i32) -> (i32, i32) {
    %c0_i32 = arith.constant 0 : i32
    %c0_i32_0 = arith.constant 0 : i32
    return %arg0, %c0_i32 : i32, i32
  }
  func.func @transform_3(%arg0: i32, %arg1: i32, %arg2: i32) -> (i32, i32, i32) {
    %c0_i32 = arith.constant 0 : i32
    return %arg2, %arg0, %arg1 : i32, i32, i32
  }
}

</mosaic_0001>

<bundles_post_ra>
// kernel: tpu_custom_call.1
= control target key start
LH: loop header
LB: loop body
LE: loop exit
PB: predicated region body
PF: predicated region fallthrough
CT: control target
= control target key end

     0   :  { %8 = vsyncpa [#allocation3], 0  ;;  %s746_s0 = inlined_call_operand.vmem [shape: f32[2,4,16], index: 0, kind: input, shape index: {}]   ;;  %s747_s1 = inlined_call_operand.vmem [shape: f32[8,4], index: 1, kind: input, shape index: {}]   ;;  %s748_s2 = inlined_call_operand.vmem [shape: f32[8,1], index: 2, kind: input, shape index: {}]   ;;  %s749_s3 = inlined_call_operand.hbm [shape: f32[2,8,16], index: 3, kind: output, shape index: {}]  }
   0x1   :  { %10 = vsyncpa [#allocation3 + $0x1], 0  ;;  %s628_s12 = smov 0   ;;  %s630_s13 = smov 0  }
   0x2   :  { %s632_s14 = smov 0   ;;  %s634_s15 = smov 0  }
   0x3   :  { %s636_s16 = smov 0   ;;  %s638_s17 = smov 0  }
   0x4 LB: > { %s443_s18 = sadd.s32 4294967295, %s602_s17   ;;  %s444_s19 = sadd.s32 4294967294, %s602_s17   ;;  %s602_s17 = sphi %s638_s17, %s16_s17   ;;  %s598_s16 = sphi %s636_s16, %s756_s16   ;;  %s594_s15 = sphi %s634_s15, %s755_s15   ;;  %s590_s14 = sphi %s632_s14, %s754_s14   ;;  %s586_s13 = sphi %s630_s13, %s753_s13   ;;  %s582_s12 = sphi %s628_s12, %s752_s12  }
   0x5   : > { %s28_s20 = sadd.s32 1, %s598_s16  ;;  %s126_s21 = sadd.s32 1, %s590_s14 }
   0x6   : > { %p29_p0 = scmp.ge.s32.totalorder %s28_s20, 2  ;;  %p136_p1 = scmp.ne.s32.totalorder %s590_s14, %s586_s13 }
   0x7   : > { %p137_p2 = scmp.eq.s32.totalorder %s443_s18, 1  ;;  %p142_p3 = scmp.ne.s32.totalorder %s586_s13, %s582_s12 }
   0x8   : > { %s758_s20 = smov (%p29_p0, %s28_s20), 0  ;;  %p143_p5 = scmp.eq.s32.totalorder %s444_s19, 1 }
   0x9   : > { %p668_p4 = por %p137_p2, %p136_p1  ;;  %s119_s23 = ssub.s32 %s598_s16, %s758_s20 }
   0xa   : > { %p449_p6 = scmp.ge.s32.totalorder %s602_s17, 1  ;;  %p124_p7 = scmp.eq.s32.totalorder %s119_s23, 0 }
   0xb   : > { %p675_p8 = por %p143_p5, %p142_p3  ;;  %p185_p9 = scmp.lt.s32.totalorder %s602_s17, 3 }
   0xc   : > { %s681_s25 = scalar_select %p124_p7, %s590_s14, %s126_s21  }
   0xd   : > { %p186_p10 = pnand %p449_p6, %p185_p9 }
   0xe   : > { %p219_p11 = scmp.lt.s32.totalorder (!%p186_p10), %s594_s15, 1  ;;  %v604_v0 = vmov (!%p186_p10), 0.0   ;;  %vm605_vm0 = vmmov (!%p186_p10), 0   ;;  %v236_v1 = vld [vmem:[%s748_s2] sm:$0xff] (!%p186_p10)  ;;  %v606_v2 = vmov (!%p186_p10), 0   ;;  %vm246_vm1 = vcmask (!%p186_p10), 1043456  }
   0xf   : > { %189 = sbr.rel (%p186_p10) target bundleno = 256 (0x100), region = 32  ;;  %460 = vmatprep.subr.mxu0 (!%p186_p10), %v604_v0  ;;  %462 = vmatprep.mubr.msk.f32.mxu0 (!%p186_p10), %vm605_vm0, %v604_v0  ;;  %v234_v3 = vld [vmem:[%s747_s1] sm:$0xff] (!%p186_p10)  ;;  %vm242_vm2 = vcmask (!%p186_p10), 31744   ;;  %s216_s8 = sand.u32 (!%p186_p10), 1, %s586_s13   ;;  %vm320_vm3 = vcmask (!%p186_p10), 130048  }
  0x10   : > { %523 = vset.pattern.permute.xlu0 (!%p186_p10), %v606_v2  ;;  %s450_s9 = sshll.u32 (!%p186_p10), %s216_s8, 3  ;;  %s455_s10 = sshll.u32 (!%p186_p10), %s594_s15, 7 }
  0x11   : > { %239 = vperm.xlu0 (!%p186_p10), %523, %v236_v1   ;;  %s218_s11 = scalar_lea.vmem (!%p186_p10), [#allocation2], %s450_s9  ;;  %s699_s23 = scalar_lea.hbm (!%p186_p10), %s749_s3, %s455_s10 }
  0x12   : > { %s338_s18 = sshll.u32 (!%p186_p10), %s218_s11, 4  ;;  %s323_s26 = scalar_lea.sflag (!%p186_p10), [#allocation3], %s216_s8  ;;  %s701_s18 = int_to_ptr.vmem [resolvable:$true] %s338_s18 }
  0x13   : > { %s524_s27 = scalar_lea.vmem (!%p186_p10), %s701_s18, 128 }
  0x14   : > { %p525_p12 = scmp.ne.s32.totalorder (!%p186_p10), %s701_s18, %s524_s27 }
  0x16   : > { %s220_s28 = scalar_select %p219_p11, %s594_s15, 1 }
  0x17   : > { %p526_p13 = pnand %p525_p12, %p668_p4  ;;  %s607_s15 = smov [#allocation2]  }
  0x18   : > { %s451_s29 = sshll.u32 %s220_s28, 2  ;;  %s528_s28 = sshll.u32 %s607_s15, 4  ;;  %s529_s28 = int_to_ptr.vmem [resolvable:$false] %s528_s28 }
  0x19   : > { %s225_s5 = scalar_lea.vmem %s746_s0, %s451_s29  ;;  %p527_p0 = pneg %p526_p13 }
  0x1a   : > { %v235_v4 = vld [vmem:[%s225_s5] sm:$0xf]  ;;  %s530_s29 = scalar_lea.vmem %s529_s28, 256  ;;  %p531_p1 = scmp.lt.s32.totalorder %s701_s18, %s529_s28 }
  0x1b   : > { %461 = vmatpush3.msk.msra.mxu0 %vm246_vm1, %v235_v4  ;;  %p532_p2 = scmp.lt.s32.totalorder %s530_s29, %s524_s27 }
  0x1c   : > { %463 = vmatmul.mubr.msk.f32.vlgmr.msra.gmra.mrb[0].mxu0 %vm242_vm2, %v234_v3 }
  0x1d   : > { %p533_p3 = por %p532_p2, %p531_p1 }
  0x1f   : > { %p534_p5 = pnand %p533_p3, %p527_p0 }
  0x90   : > { %v240_v5 = vpop.permute.xlu0 %239 }
  0xef   : > { %v316_v6 = vpop.f32.mrb[0].mxu0 }
  0xf0   : > { %v317_v7 = vadd.f32 %v316_v6, %v240_v5  ;;  %v464_v8 = vpop.f32.mrb[1].mxu0 }
  0xf2   : > { %321 = vst.msk [vmem:[%s218_s11] sm:$0xff] %vm320_vm3, %v317_v7 }
  0xf3   : > { %537 = shalt.err (!%p534_p5)
}
  0xf4   : > { %s538_s30 = scalar_lea.hbm %s699_s23, 128  ;;  %s542_s6 = scalar_lea.hbm %s749_s3, 256 }
  0xf5   : > { %p539_p6 = scmp.ne.s32.totalorder %s699_s23, %s538_s30  ;;  %p543_p10 = scmp.lt.u32.totalorder %s699_s23, %s749_s3 }
  0xf6   : > { %p544_p11 = scmp.lt.u32.totalorder %s542_s6, %s538_s30  ;;  %p546_p13 = scmp.lt.u32.totalorder %s538_s30, %s699_s23 }
  0xf7   : > { %p540_p7 = pnand %p539_p6, %p668_p4 }
  0xf8   : > { %p545_p12 = por %p544_p11, %p543_p10 }
  0xf9   : > { %p541_p9 = pneg %p540_p7 }
  0xfa   : > { %p547_p0 = por %p546_p13, %p545_p12 }
  0xfc   : > { %p548_p1 = pnand %p547_p0, %p541_p9 }
  0xfe   : > { %551 = shalt.err (!%p548_p1)
}
  0xff   : > { %465 = dma.vmem_to_hbm [thread:$0]  (%p668_p4), %s701_s18, 128, %s699_s23, %s323_s26  }
 0x100 PF: > { %p471_p2 = scmp.ge.s32.totalorder %s602_s17, 2  ;;  %s350_s9 = sand.u32 1, %s582_s12  }
 0x101   : > { %s351_s10 = scalar_lea.sflag [#allocation3], %s350_s9 }
 0x102   : > { %p468_p3 = pnand %p471_p2, %p675_p8 }
 0x104   : > { %577 = dma.done.wait (!%p468_p3), %s351_s10, 128  }
 0x105   : > { %579 = vsyncadd (!%p468_p3), %s351_s10, 4294967168  ;;  %s16_s17 = sadd.s32 1, %s602_s17   ;;  %s752_s12 = smov %s586_s13 }
 0x106   : > { %p13_p5 = scmp.ge.s32.totalorder %s16_s17, 4   ;;  %s753_s13 = smov %s590_s14 }
 0x107   : > { %s754_s14 = smov %s681_s25  ;;  %s755_s15 = smov %s598_s16 }
 0x108   : > { %s756_s16 = smov %s758_s20  ;;  %15 = sbr.rel (!%p13_p5) target bundleno = 4 (0x4), region = 73 }
 0x10f   :  { %356 = vsyncpa [#allocation3], 1 }
 0x110   :  { %358 = vsyncpa [#allocation3 + $0x1], 1 }

</bundles_post_ra>
